<compile_context>
chip_gen: v7x
topology: tpu7x:2x2x1
jax: 0.10.0
libtpu: 0.0.40
codegen_flags: <defaults>
</compile_context>

<pallas_src>
import functools

import jax
import jax.numpy as jnp
from jax.experimental import pallas as pl
from jax.experimental.pallas import tpu as pltpu


# ---------------------------------------------------------------------------
# Helpers.
# ---------------------------------------------------------------------------
def _round_up(x, k):
    return ((x + k - 1) // k) * k


def _vmem_capacity_bytes():
    try:
        info = pltpu.get_tpu_info()
        cap = getattr(info, "vmem_capacity_bytes", None)
        return int(cap) if cap else None
    except Exception:
        return None


def _input_budget_bytes():
    """Budget for (all inputs) x (pipeline buffers), per TPU generation."""
    cap = _vmem_capacity_bytes()
    if cap is not None and cap >= (96 << 20):
        return 24 << 20          # v5e / v6e: 128 MiB physical VMEM
    return 8 << 20               # v7x (64 MiB per TC) or unknown: stay safe


def _buffered_in_spec(shape, index_map, nbuf):
    """Input BlockSpec with optional >2-deep buffering; graceful fallback."""
    if nbuf > 2:
        try:
            return pl.BlockSpec(shape, index_map, pipeline_mode=pl.Buffered(nbuf))
        except Exception:
            pass
    return pl.BlockSpec(shape, index_map)


def _finalize(lin_parts, sq_parts, m, n, rho):
    """Combine per-core partial sums; apply 1/count scaling and the sqrt."""
    inv = 1.0 / float(m * n)
    s_lin = jnp.sum(lin_parts.astype(jnp.float32))
    s_sq = jnp.sum(sq_parts.astype(jnp.float32))
    return s_lin * inv + (float(rho) * 0.5) * jnp.sqrt(s_sq * inv)


# ---------------------------------------------------------------------------
# Small-D fast path: one block; params row-limited to ~m rows, sliced in-kernel.
# ---------------------------------------------------------------------------
def _admm_small_kernel(d_ref, a_ref, g_ref, lin_ref, sq_ref, *, mu, m, n):
    d = d_ref[...].astype(jnp.float32)
    a = a_ref[:m, :n].astype(jnp.float32)    # static in-kernel slice
    g = g_ref[:m, :n].astype(jnp.float32)

    diff = d - a
    lin = mu * jnp.abs(a) + g * jnp.abs(diff)     # fused linear terms
    sq = diff * diff

    s_lin = jnp.sum(jnp.sum(lin, axis=1, keepdims=True), axis=0, keepdims=True)
    s_sq = jnp.sum(jnp.sum(sq, axis=1, keepdims=True), axis=0, keepdims=True)
    lin_ref[...] = s_lin.reshape(1, 1, 1)
    sq_ref[...] = s_sq.reshape(1, 1, 1)


def _admm_small(D, alterD, gamma, mu):
    m, n = D.shape
    da, db = alterD.shape
    rp = min(_round_up(m, 8), da)        # only DMA the first ~m rows of params

    kernel = functools.partial(_admm_small_kernel, mu=float(mu), m=m, n=n)
    lin, sq = pl.pallas_call(
        kernel,
        out_shape=(jax.ShapeDtypeStruct((1, 1, 1), jnp.float32),
                   jax.ShapeDtypeStruct((1, 1, 1), jnp.float32)),
        grid_spec=pltpu.PrefetchScalarGridSpec(
            num_scalar_prefetch=0,
            grid=(1,),
            in_specs=[
                pl.BlockSpec((m, n), lambda i: (0, 0)),     # D (full)
                pl.BlockSpec((rp, db), lambda i: (0, 0)),   # alterD: first rows
                pl.BlockSpec((rp, db), lambda i: (0, 0)),   # gamma:  first rows
            ],
            out_specs=(pl.BlockSpec((1, 1, 1), lambda i: (0, 0, 0)),
                       pl.BlockSpec((1, 1, 1), lambda i: (0, 0, 0))),
        ),
        compiler_params=pltpu.CompilerParams(
            dimension_semantics=("arbitrary",)),
        cost_estimate=pl.CostEstimate(
            flops=8 * m * n, transcendentals=0,
            bytes_accessed=(m * n + 2 * rp * db) * 4 + 8),
    )(D, alterD, gamma)
    return lin, sq


# ---------------------------------------------------------------------------
# Gridded path: 2-D (core, step) grid over row blocks, vreg accumulators.
# ---------------------------------------------------------------------------
def _admm_grid_kernel(d_ref, a_ref, g_ref, lin_ref, sq_ref,
                      acc_lin_ref, acc_sq_ref,
                      *, mu, m, n, wp, tm, spc, mask_rows):
    c = pl.program_id(0)     # core slice of the row axis ("parallel")
    i = pl.program_id(1)     # step within the core's slice ("arbitrary")

    @pl.when(i == 0)
    def _():
        acc_lin_ref[...] = jnp.zeros_like(acc_lin_ref)
        acc_sq_ref[...] = jnp.zeros_like(acc_sq_ref)

    d = d_ref[...].astype(jnp.float32)
    if wp == n:
        a = a_ref[...]
        g = g_ref[...]
    else:                    # params blocked wider (lane-aligned); slice in-kernel
        a = a_ref[:, :n]
        g = g_ref[:, :n]
    a = a.astype(jnp.float32)
    g = g.astype(jnp.float32)

    diff = d - a
    lin = mu * jnp.abs(a) + g * jnp.abs(diff)     # fused linear terms
    sq = diff * diff

    if mask_rows:
        blk = c * spc + i                          # UNclamped logical block id
        row = blk * tm + jax.lax.broadcasted_iota(jnp.int32, (tm, 1), 0)
        valid = row < m                            # tail rows + phantom blocks
        lin = jnp.where(valid, lin, 0.0)
        sq = jnp.where(valid, sq, 0.0)

    # Tile-preserving reshape; axis-0 sum = pure VPU vreg adds (no XLU here).
    acc_lin_ref[...] += lin.reshape(tm // 8, 8, n).sum(axis=0)
    acc_sq_ref[...] += sq.reshape(tm // 8, 8, n).sum(axis=0)

    @pl.when(i == spc - 1)
    def _():
        # One-time XLU cross-lane/sublane reduce per core; sqrt done in wrapper.
        s_lin = jnp.sum(jnp.sum(acc_lin_ref[...], axis=1, keepdims=True),
                        axis=0, keepdims=True)
        s_sq = jnp.sum(jnp.sum(acc_sq_ref[...], axis=1, keepdims=True),
                       axis=0, keepdims=True)
        lin_ref[...] = s_lin.reshape(1, 1, 1)
        sq_ref[...] = s_sq.reshape(1, 1, 1)


def _admm_grid(D, alterD, gamma, mu, block_rows):
    m, n = D.shape
    da, db = alterD.shape

    # Parameter block width: lane-aligned, never wider than dim.
    if n % 128 == 0 or n == db:
        wp = n
    else:
        wp = min(_round_up(n, 128), db)

    budget = _input_budget_bytes()
    bytes_per_row = (n + 2 * wp) * 4              # one row of all three inputs
    m8 = _round_up(m, 8)

    tm_budget = max(8, (budget // (2 * bytes_per_row) // 8) * 8)
    # Prefer >= ~4 row blocks (DMA/compute overlap + work for both v7x cores),
    # capped by the VMEM budget and the problem size.
    tm_target = max(8, _round_up(pl.cdiv(m8, 4), 8))
    tm = min(tm_budget, tm_target, m8)
    if block_rows is not None:
        tm = min(max(8, _round_up(int(block_rows), 8)), m8, tm_budget)

    nb = pl.cdiv(m, tm)                           # row blocks (last may be partial)
    nc = 2 if nb >= 2 else 1                      # one "parallel" slice per v7x core
    spc = pl.cdiv(nb, nc)                         # steps per core
    mask_rows = (nc * spc * tm) != m

    if nc * spc == nb:
        row_map = lambda c, i: (c * spc + i, 0)
    else:                                         # clamp phantom blocks (masked)
        row_map = lambda c, i: (jnp.minimum(c * spc + i, nb - 1), 0)

    stage_bytes = tm * bytes_per_row
    nbuf = 3 if stage_bytes <= (256 << 10) else 2  # deeper buffering for tiny tiles

    cap = _vmem_capacity_bytes()
    limit_hi = min(48 << 20, cap * 3 // 4) if cap else (48 << 20)

    def _run(num_buffers):
        footprint = (num_buffers * stage_bytes
                     + 2 * 8 * _round_up(n, 128) * 4 + (1 << 16))
        vmem_limit = min(max(footprint * 13 // 10 + (1 << 20), 16 << 20), limit_hi)

        kernel = functools.partial(
            _admm_grid_kernel, mu=float(mu), m=m, n=n, wp=wp, tm=tm, spc=spc,
            mask_rows=mask_rows)

        return pl.pallas_call(
            kernel,
            out_shape=(jax.ShapeDtypeStruct((nc, 1, 1), jnp.float32),
                       jax.ShapeDtypeStruct((nc, 1, 1), jnp.float32)),
            grid_spec=pltpu.PrefetchScalarGridSpec(
                num_scalar_prefetch=0,
                grid=(nc, spc),
                in_specs=[
                    _buffered_in_spec((tm, n), row_map, num_buffers),   # D
                    _buffered_in_spec((tm, wp), row_map, num_buffers),  # alterD (full)
                    _buffered_in_spec((tm, wp), row_map, num_buffers),  # gamma  (full)
                ],
                out_specs=(pl.BlockSpec((1, 1, 1), lambda c, i: (c, 0, 0)),
                           pl.BlockSpec((1, 1, 1), lambda c, i: (c, 0, 0))),
                scratch_shapes=[pltpu.VMEM((8, n), jnp.float32),
                                pltpu.VMEM((8, n), jnp.float32)],
            ),
            compiler_params=pltpu.CompilerParams(
                dimension_semantics=("parallel", "arbitrary"),
                vmem_limit_bytes=int(vmem_limit)),
            cost_estimate=pl.CostEstimate(
                flops=8 * m * n, transcendentals=0,
                bytes_accessed=(m * n + 2 * m * wp) * 4 + 16),
        )(D, alterD, gamma)

    try:
        return _run(nbuf)
    except Exception:
        if nbuf <= 2:
            raise
        return _run(2)       # safe fallback if 3-deep buffering is rejected


# ---------------------------------------------------------------------------
# Public wrapper (matches ADMM.forward semantics).
# ---------------------------------------------------------------------------
def admm_loss(D, alterD, gamma, *, mu=0.2, rho=0.3, block_rows=None,
              small_path_bytes=4 << 20):
    """Pallas implementation of ADMM.forward.  Returns a scalar float32 loss."""
    m, n = D.shape
    da, db = alterD.shape
    assert gamma.shape == alterD.shape
    assert m <= da and n <= db, "D must fit inside the (dim, dim) parameters"

    # Gate the fast path on its REAL VMEM footprint (D plus the param rows it
    # actually brings in), not just 3*m*n.
    rp = min(_round_up(m, 8), da)
    real_footprint = (m * n + 2 * rp * db) * 4
    if block_rows is None and real_footprint <= small_path_bytes:
        lin, sq = _admm_small(D, alterD, gamma, mu)
    else:
        lin, sq = _admm_grid(D, alterD, gamma, mu, block_rows)
    return _finalize(lin, sq, m, n, rho)


def admm_loss_ref(D, alterD, gamma, *, mu=0.2, rho=0.3):
    m, n = D.shape
    a = alterD[:m, :n]
    g = gamma[:m, :n]
    loss_reg = mu * jnp.mean(jnp.abs(a))
    loss_constraint = rho / 2.0 * jnp.mean((D - a) ** 2) ** 0.5
    loss_relax = jnp.mean(g * jnp.abs(D - a))
    return loss_reg + loss_constraint + loss_relax


if __name__ == "__main__":
    key = jax.random.PRNGKey(0)
    k = jax.random.split(key, 9)

    # case 1: small-D fast path (row-limited param DMA, single grid step).
    dim, m, n = 32, 16, 32
    alterD = jax.random.uniform(k[0], (dim, dim), dtype=jnp.float32)
    gamma = jax.random.uniform(k[1], (dim, dim), dtype=jnp.float32)
    D = jax.random.normal(k[2], (m, n), dtype=jnp.float32)
    loss = jax.block_until_ready(admm_loss(D, alterD, gamma))
    ref = admm_loss_ref(D, alterD, gamma)
    assert jnp.allclose(loss, ref, atol=1e-5, rtol=1e-5), (loss, ref)

    # case 2: gridded path (forced), auto tile -- exercises the in-kernel
    # column slice (n % 128 != 0), row-tail masking, the 2-core "parallel"
    # axis, and (when supported) 3-deep input buffering for small tiles.
    dim2, m2, n2 = 256, 200, 192
    alterD2 = jax.random.uniform(k[3], (dim2, dim2), dtype=jnp.float32)
    gamma2 = jax.random.uniform(k[4], (dim2, dim2), dtype=jnp.float32)
    D2 = jax.random.normal(k[5], (m2, n2), dtype=jnp.float32)
    loss2 = jax.block_until_ready(
        admm_loss(D2, alterD2, gamma2, small_path_bytes=0))
    ref2 = admm_loss_ref(D2, alterD2, gamma2)
    assert jnp.allclose(loss2, ref2, atol=1e-4, rtol=1e-4), (loss2, ref2)

    # case 3: user-forced block_rows -> odd block count split over two cores
    # (phantom block clamped in index_map + masked), n % 128 == 0 path.
    dim3, m3, n3 = 128, 120, 128
    alterD3 = jax.random.uniform(k[6], (dim3, dim3), dtype=jnp.float32)
    gamma3 = jax.random.uniform(k[7], (dim3, dim3), dtype=jnp.float32)
    D3 = jax.random.normal(k[8], (m3, n3), dtype=jnp.float32)
    loss3 = jax.block_until_ready(
        admm_loss(D3, alterD3, gamma3, block_rows=48))
    ref3 = admm_loss_ref(D3, alterD3, gamma3)
    assert jnp.allclose(loss3, ref3, atol=1e-4, rtol=1e-4), (loss3, ref3)

    print("KERNEL_OK")
</pallas_src>

<mosaic_0001>
module attributes {stable_mosaic.version = 11 : i64} {
  func.func @_admm_small_kernel(%arg0: i32, %arg1: memref<16x32xf32, #tpu.memory_space<vmem>>, %arg2: memref<16x32xf32, #tpu.memory_space<vmem>>, %arg3: memref<16x32xf32, #tpu.memory_space<vmem>>, %arg4: memref<1x1x1xf32, #tpu.memory_space<vmem>>, %arg5: memref<1x1x1xf32, #tpu.memory_space<vmem>>) attributes {dimension_semantics = [#tpu.dimension_semantics<arbitrary>], iteration_bounds = array<i64: 1>, scalar_prefetch = 0 : i64, scratch_operands = 0 : i64, tpu.core_type = #tpu.core_type<tc>, window_params = [{pipeline_mode = #tpu.pipeline_mode<synchronous>, transform_indices = @transform_0, window_bounds = array<i64: 16, 32>}, {transform_indices = @transform_1, window_bounds = array<i64: 16, 32>}, {transform_indices = @transform_2, window_bounds = array<i64: 16, 32>}, {pipeline_mode = #tpu.pipeline_mode<synchronous>, transform_indices = @transform_3, window_bounds = array<i64: 1, 1, 1>}, {pipeline_mode = #tpu.pipeline_mode<synchronous>, transform_indices = @transform_4, window_bounds = array<i64: 1, 1, 1>}]} {
    %c0 = arith.constant 0 : index
    %c0_0 = arith.constant 0 : index
    %0 = vector.load %arg1[%c0, %c0_0] : memref<16x32xf32, #tpu.memory_space<vmem>>, vector<16x32xf32>
    %c0_1 = arith.constant 0 : index
    %c0_2 = arith.constant 0 : index
    %1 = vector.load %arg2[%c0_1, %c0_2] : memref<16x32xf32, #tpu.memory_space<vmem>>, vector<16x32xf32>
    %c0_3 = arith.constant 0 : index
    %c0_4 = arith.constant 0 : index
    %2 = vector.load %arg3[%c0_3, %c0_4] : memref<16x32xf32, #tpu.memory_space<vmem>>, vector<16x32xf32>
    %3 = arith.subf %0, %1 : vector<16x32xf32>
    %4 = math.absf %1 : vector<16x32xf32>
    %cst = arith.constant 2.000000e-01 : f32
    %5 = vector.broadcast %cst : f32 to vector<16x32xf32>
    %6 = arith.mulf %5, %4 : vector<16x32xf32>
    %7 = math.absf %3 : vector<16x32xf32>
    %8 = arith.mulf %2, %7 : vector<16x32xf32>
    %9 = arith.addf %6, %8 : vector<16x32xf32>
    %10 = arith.mulf %3, %3 : vector<16x32xf32>
    %cst_5 = arith.constant dense<0.000000e+00> : vector<16xf32>
    %11 = vector.multi_reduction <add>, %9, %cst_5 [1] : vector<16x32xf32> to vector<16xf32>
    %12 = vector.shape_cast %11 : vector<16xf32> to vector<16x1xf32>
    %cst_6 = arith.constant dense<0.000000e+00> : vector<1xf32>
    %13 = vector.multi_reduction <add>, %12, %cst_6 [0] : vector<16x1xf32> to vector<1xf32>
    %14 = vector.shape_cast %13 : vector<1xf32> to vector<1x1xf32>
    %cst_7 = arith.constant dense<0.000000e+00> : vector<16xf32>
    %15 = vector.multi_reduction <add>, %10, %cst_7 [1] : vector<16x32xf32> to vector<16xf32>
    %16 = vector.shape_cast %15 : vector<16xf32> to vector<16x1xf32>
    %cst_8 = arith.constant dense<0.000000e+00> : vector<1xf32>
    %17 = vector.multi_reduction <add>, %16, %cst_8 [0] : vector<16x1xf32> to vector<1xf32>
    %18 = vector.shape_cast %17 : vector<1xf32> to vector<1x1xf32>
    %19 = vector.shape_cast %14 : vector<1x1xf32> to vector<1x1x1xf32>
    %c0_9 = arith.constant 0 : index
    %c0_10 = arith.constant 0 : index
    %c0_11 = arith.constant 0 : index
    %20 = vector.load %arg4[%c0_9, %c0_10, %c0_11] : memref<1x1x1xf32, #tpu.memory_space<vmem>>, vector<1x1x1xf32>
    tpu.vector_store %arg4[%c0_9, %c0_10, %c0_11], %19 {strides = array<i32>} : memref<1x1x1xf32, #tpu.memory_space<vmem>>, vector<1x1x1xf32>,
    %21 = vector.shape_cast %18 : vector<1x1xf32> to vector<1x1x1xf32>
    %c0_12 = arith.constant 0 : index
    %c0_13 = arith.constant 0 : index
    %c0_14 = arith.constant 0 : index
    %22 = vector.load %arg5[%c0_12, %c0_13, %c0_14] : memref<1x1x1xf32, #tpu.memory_space<vmem>>, vector<1x1x1xf32>
    tpu.vector_store %arg5[%c0_12, %c0_13, %c0_14], %21 {strides = array<i32>} : memref<1x1x1xf32, #tpu.memory_space<vmem>>, vector<1x1x1xf32>,
    return
  }
  func.func @transform_0(%arg0: i32) -> (i32, i32) {
    %c0_i32 = arith.constant 0 : i32
    %c0_i32_0 = arith.constant 0 : i32
    %c0_i32_1 = arith.constant 0 : i32
    return %c0_i32, %c0_i32_0 : i32, i32
  }
  func.func @transform_1(%arg0: i32) -> (i32, i32) {
    %c0_i32 = arith.constant 0 : i32
    %c0_i32_0 = arith.constant 0 : i32
    %c0_i32_1 = arith.constant 0 : i32
    return %c0_i32, %c0_i32_0 : i32, i32
  }
  func.func @transform_2(%arg0: i32) -> (i32, i32) {
    %c0_i32 = arith.constant 0 : i32
    %c0_i32_0 = arith.constant 0 : i32
    %c0_i32_1 = arith.constant 0 : i32
    return %c0_i32, %c0_i32_0 : i32, i32
  }
  func.func @transform_3(%arg0: i32) -> (i32, i32, i32) {
    %c0_i32 = arith.constant 0 : i32
    %c0_i32_0 = arith.constant 0 : i32
    %c0_i32_1 = arith.constant 0 : i32
    %c0_i32_2 = arith.constant 0 : i32
    return %c0_i32, %c0_i32_0, %c0_i32_1 : i32, i32, i32
  }
  func.func @transform_4(%arg0: i32) -> (i32, i32, i32) {
    %c0_i32 = arith.constant 0 : i32
    %c0_i32_0 = arith.constant 0 : i32
    %c0_i32_1 = arith.constant 0 : i32
    %c0_i32_2 = arith.constant 0 : i32
    return %c0_i32, %c0_i32_0, %c0_i32_1 : i32, i32, i32
  }
}

</mosaic_0001>

<bundles_post_ra>
// kernel: tpu_custom_call.1
= control target key start
LH: loop header
LB: loop body
LE: loop exit
PB: predicated region body
PF: predicated region fallthrough
CT: control target
= control target key end

     0   :  { %10 = vsyncpa [#allocation3], 0  ;;  %s384_s0 = inlined_call_operand.hbm [shape: f32[16,32], index: 0, kind: input, shape index: {}]   ;;  %s385_s1 = inlined_call_operand.hbm [shape: f32[32,32], index: 1, kind: input, shape index: {}]   ;;  %s386_s2 = inlined_call_operand.hbm [shape: f32[32,32], index: 2, kind: input, shape index: {}]   ;;  %s387_s3 = inlined_call_operand.hbm [shape: f32[1,1,1], index: 3, kind: output, shape index: {0}]   ;;  %s388_s4 = inlined_call_operand.hbm [shape: f32[1,1,1], index: 4, kind: output, shape index: {1}]  }
   0x1   :  { %11 = vsyncpa [#allocation6], 0 }
   0x2   :  { %12 = vsyncpa [#allocation4], 0 }
   0x3   :  { %13 = vsyncpa [#allocation10], 0  ;;  %s264_s15 = smov [#allocation5]   ;;  %s265_s17 = smov [#allocation2]  }
   0x4   :  { %s31_s16 = sshll.u32 %s264_s15, 4  ;;  %s19_s18 = sshll.u32 %s265_s17, 4  ;;  %s32_s16 = int_to_ptr.vmem [resolvable:$true] %s31_s16  ;;  %s296_s18 = int_to_ptr.vmem [resolvable:$true] %s19_s18 }
   0x5   :  { %s146_s21 = scalar_lea.hbm %s385_s1, 256  ;;  %s148_s26 = scalar_lea.hbm %s385_s1, 512 }
   0x6   :  { %p147_p0 = scmp.ne.s32.totalorder %s385_s1, %s146_s21  ;;  %p149_p1 = scmp.lt.u32.totalorder %s148_s26, %s146_s21 }
   0x7   :  { %p150_p2 = scmp.lt.u32.totalorder %s146_s21, %s385_s1 }
   0x9   :  { %p151_p3 = por %p150_p2, %p149_p1 }
   0xb   :  { %p152_p4 = pnand %p151_p3, %p147_p0 }
   0xd   :  { %155 = shalt.err (!%p152_p4)
}
   0xe   :  { %s156_s29 = scalar_lea.vmem %s32_s16, 256  ;;  %p161_p6 = scmp.lt.s32.totalorder %s32_s16, %s32_s16 }
   0xf   :  { %p157_p5 = scmp.ne.s32.totalorder %s32_s16, %s156_s29  ;;  %p162_p7 = scmp.lt.s32.totalorder %s156_s29, %s156_s29 }
  0x11   :  { %p163_p8 = por %p162_p7, %p161_p6 }
  0x13   :  { %p164_p9 = pnand %p163_p8, %p157_p5 }
  0x15   :  { %167 = shalt.err (!%p164_p9)
}
  0x16   :  { %s266_s30 = smov 128   ;;  %s267_s5 = smov 8  }
  0x17   :  { %37 = dma.hbm_to_vmem [thread:$0]  %s385_s1, 256, %s32_s16, [#allocation6], %s266_s30, %s266_s30, %s267_s5  }
  0x18   :  { %s168_s10 = scalar_lea.hbm %s384_s0, 256 }
  0x19   :  { %p169_p10 = scmp.ne.s32.totalorder %s384_s0, %s168_s10  ;;  %p172_p11 = scmp.lt.u32.totalorder %s168_s10, %s384_s0 }
  0x1b   :  { %p174_p12 = pnand %p172_p11, %p169_p10 }
  0x1d   :  { %177 = shalt.err (!%p174_p12)
}
  0x1e   :  { %s178_s15 = scalar_lea.vmem %s296_s18, 256  ;;  %p183_p0 = scmp.lt.s32.totalorder %s296_s18, %s296_s18 }
  0x1f   :  { %p179_p13 = scmp.ne.s32.totalorder %s296_s18, %s178_s15  ;;  %p184_p1 = scmp.lt.s32.totalorder %s178_s15, %s178_s15 }
  0x21   :  { %p185_p2 = por %p184_p1, %p183_p0 }
  0x23   :  { %p186_p3 = pnand %p185_p2, %p179_p13 }
  0x25   :  { %189 = shalt.err (!%p186_p3)
}
  0x26   :  { %25 = dma.hbm_to_vmem [thread:$0]  %s384_s0, 256, %s296_s18, [#allocation3], %s266_s30, %s266_s30, %s267_s5  }
  0x27   :  { %s268_s17 = smov [#allocation7]   ;;  %s190_s22 = scalar_lea.hbm %s386_s2, 256 }
  0x28   :  { %s43_s19 = sshll.u32 %s268_s17, 4  ;;  %p191_p4 = scmp.ne.s32.totalorder %s386_s2, %s190_s22  ;;  %s44_s19 = int_to_ptr.vmem [resolvable:$true] %s43_s19 }
  0x29   :  { %s192_s27 = scalar_lea.hbm %s386_s2, 512  ;;  %p194_p6 = scmp.lt.u32.totalorder %s190_s22, %s386_s2 }
  0x2a   :  { %p193_p5 = scmp.lt.u32.totalorder %s192_s27, %s190_s22 }
  0x2c   :  { %p195_p7 = por %p194_p6, %p193_p5 }
  0x2e   :  { %p196_p8 = pnand %p195_p7, %p191_p4 }
  0x30   :  { %199 = shalt.err (!%p196_p8)
}
  0x31   :  { %s200_s0 = scalar_lea.vmem %s44_s19, 256  ;;  %p205_p10 = scmp.lt.s32.totalorder %s44_s19, %s44_s19 }
  0x32   :  { %p201_p9 = scmp.ne.s32.totalorder %s44_s19, %s200_s0  ;;  %p206_p11 = scmp.lt.s32.totalorder %s200_s0, %s200_s0 }
  0x34   :  { %p207_p12 = por %p206_p11, %p205_p10 }
  0x36   :  { %p208_p13 = pnand %p207_p12, %p201_p9 }
  0x38   :  { %211 = shalt.err (!%p208_p13)
}
  0x39   :  { %49 = dma.hbm_to_vmem [thread:$0]  %s386_s2, 256, %s44_s19, [#allocation6], %s266_s30, %s266_s30, %s267_s5  }
  0x3a   :  { %256 = dma.done.wait [#allocation3], 256  }
  0x3b   :  { %257 = vsyncadd [#allocation3], 4294967040 }
  0x3c   :  { %258 = dma.done.wait [#allocation6], 512  }
  0x3d   :  { %259 = vsyncadd [#allocation6], 4294966784  ;;  %v59_v0 = vld [vmem:[#allocation2] sm:$0xff]  ;;  %v61_v1 = vld [vmem:[#allocation5] sm:$0xff]  ;;  %vm79_vm0 = vcmask 261120   ;;  %s269_s2 = smov [#allocation9]  }
  0x3e   :  { %v60_v2 = vld [vmem:[#allocation2 + $0x8] sm:$0xff]  ;;  %v65_v3 = vsub.f32 %v59_v0, %v61_v1  ;;  %v62_v4 = vld [vmem:[#allocation5 + $0x8] sm:$0xff]  ;;  %v67_v5 = vand.u32 2147483647, %v61_v1  ;;  %v63_v7 = vld [vmem:[#allocation7] sm:$0xff]  ;;  %s125_s30 = sshll.u32 %s269_s2, 4  ;;  %s126_s30 = int_to_ptr.vmem [resolvable:$true] %s125_s30 }
  0x3f   :  { %v66_v6 = vsub.f32 %v60_v2, %v62_v4  ;;  %v68_v8 = vand.u32 2147483647, %v62_v4  ;;  %v64_v12 = vld [vmem:[#allocation7 + $0x8] sm:$0xff]  ;;  %vm106_vm1 = vcmask 0   ;;  %s270_s5 = smov [#allocation8]   ;;  %s212_s8 = scalar_lea.vmem %s126_s30, 16 }
  0x40   :  { %v77_v9 = vmul.f32 %v65_v3, %v65_v3  ;;  %v69_v10 = vmul.f32 0.2, %v67_v5  ;;  %v71_v11 = vand.u32 2147483647, %v65_v3  ;;  %s115_s7 = sshll.u32 %s270_s5, 4  ;;  %p213_p0 = scmp.ne.s32.totalorder %s126_s30, %s212_s8  ;;  %s116_s7 = int_to_ptr.vmem [resolvable:$true] %s115_s7 }
  0x41   :  { %v78_v13 = vmul.f32 %v66_v6, %v66_v6  ;;  %v70_v14 = vmul.f32 0.2, %v68_v8  ;;  %v72_v15 = vand.u32 2147483647, %v66_v6  ;;  %s216_s9 = scalar_lea.vmem %s126_s30, 32  ;;  %p217_p1 = scmp.lt.s32.totalorder %s126_s30, %s126_s30 }
  0x42   :  { %v93_v16 = vsel %vm79_vm0, %v77_v9, 0.0  ;;  %v73_v17 = vmul.f32 %v71_v11, %v63_v7  ;;  %p218_p2 = scmp.lt.s32.totalorder %s216_s9, %s212_s8 }
  0x43   :  { %94 = vadd.xlane.f32.xlu1 %v93_v16  ;;  %v74_v18 = vmul.f32 %v72_v15, %v64_v12  ;;  %v96_v19 = vsel %vm79_vm0, %v78_v13, 0.0 }
  0x44   :  { %v75_v20 = vadd.f32 %v73_v17, %v69_v10  ;;  %p219_p3 = por %p218_p2, %p217_p1 }
  0x45   :  { %v76_v21 = vadd.f32 %v74_v18, %v70_v14 }
  0x46   :  { %v80_v22 = vsel %vm79_vm0, %v75_v20, 0.0  ;;  %p220_p4 = pnand %p219_p3, %p213_p0 }
  0x47   :  { %97 = vadd.xlane.f32.xlu1 %v96_v19  ;;  %81 = vadd.xlane.f32.xlu0 %v80_v22  ;;  %v83_v23 = vsel %vm79_vm0, %v76_v21, 0.0 }
  0x4b   :  { %84 = vadd.xlane.f32.xlu0 %v83_v23 }
  0xd0   :  { %v95_v24 = vpop.xlane.xlu1 %94 }
  0xd4   :  { %v98_v25 = vpop.xlane.xlu1 %97  ;;  %v82_v26 = vpop.xlane.xlu0 %81 }
  0xd5   :  { %v99_v27 = vadd.f32 %v98_v25, %v95_v24 }
  0xd7   :  { %v100_v28 = vrot.slane %v99_v27, 4 }
  0xd8   :  { %v85_v29 = vpop.xlane.xlu0 %84 }
  0xd9   :  { %v101_v30 = vadd.f32 %v100_v28, %v99_v27  ;;  %v86_v31 = vadd.f32 %v85_v29, %v82_v26 }
  0xdb   :  { %v102_v32 = vrot.slane %v101_v30, 2  ;;  %v87_v33 = vrot.slane %v86_v31, 4 }
  0xdd   :  { %v103_v34 = vadd.f32 %v102_v32, %v101_v30  ;;  %v88_v35 = vadd.f32 %v87_v33, %v86_v31 }
  0xdf   :  { %v104_v36 = vrot.slane %v103_v34, 1  ;;  %v89_v37 = vrot.slane %v88_v35, 2 }
  0xe1   :  { %v90_v38 = vadd.f32 %v89_v37, %v88_v35  ;;  %v105_v39 = vadd.f32 %v104_v36, %v103_v34 }
  0xe3   :  { %v91_v40 = vrot.slane %v90_v38, 1  ;;  %108 = vst.msk [vmem:[#allocation9] sm:$0x1] %vm106_vm1, %v105_v39 }
  0xe4   :  { %223 = shalt.err (!%p220_p4)
}
  0xe5   :  { %s224_s12 = scalar_lea.hbm %s388_s4, 16 }
  0xe6   :  { %p225_p5 = scmp.ne.s32.totalorder %s388_s4, %s224_s12  ;;  %p228_p6 = scmp.lt.u32.totalorder %s224_s12, %s388_s4 }
  0xe8   :  { %p230_p7 = pnand %p228_p6, %p225_p5 }
  0xea   :  { %233 = shalt.err (!%p230_p7)
}
  0xeb   :  { %128 = dma.vmem_to_hbm [thread:$0]  %s126_s30, 16, %s388_s4, [#allocation10]   ;;  %v92_v41 = vadd.f32 %v91_v40, %v90_v38 }
  0xec   :  { %s234_s19 = scalar_lea.vmem %s116_s7, 16  ;;  %s238_s20 = scalar_lea.vmem %s116_s7, 32 }
  0xed   :  { %107 = vst.msk [vmem:[#allocation8] sm:$0x1] %vm106_vm1, %v92_v41  ;;  %p235_p8 = scmp.ne.s32.totalorder %s116_s7, %s234_s19  ;;  %p239_p9 = scmp.lt.s32.totalorder %s116_s7, %s116_s7 }
  0xee   :  { %p240_p10 = scmp.lt.s32.totalorder %s238_s20, %s234_s19 }
  0xf0   :  { %p241_p11 = por %p240_p10, %p239_p9 }
  0xf2   :  { %p242_p12 = pnand %p241_p11, %p235_p8 }
  0xf4   :  { %245 = shalt.err (!%p242_p12)
}
  0xf5   :  { %s246_s23 = scalar_lea.hbm %s387_s3, 16 }
  0xf6   :  { %p247_p13 = scmp.ne.s32.totalorder %s387_s3, %s246_s23  ;;  %p250_p0 = scmp.lt.u32.totalorder %s246_s23, %s387_s3 }
  0xf8   :  { %p252_p1 = pnand %p250_p0, %p247_p13 }
  0xfa   :  { %255 = shalt.err (!%p252_p1)
}
  0xfb   :  { %118 = dma.vmem_to_hbm [thread:$0]  %s116_s7, 16, %s387_s3, [#allocation4]  }
  0xfc   :  { %260 = dma.done.wait [#allocation4], 16  }
  0xfd   :  { %261 = vsyncadd [#allocation4], 4294967280 }
  0xfe   :  { %262 = dma.done.wait [#allocation10], 16  }
  0xff   :  { %263 = vsyncadd [#allocation10], 4294967280 }
 0x100   :  { %135 = vsyncpa [#allocation3], 1 }
 0x101   :  { %136 = vsyncpa [#allocation6], 1 }
 0x102   :  { %137 = vsyncpa [#allocation4], 1 }
 0x103   :  { %138 = vsyncpa [#allocation10], 1 }

</bundles_post_ra>
